<compile_context>
chip_gen: v6e
topology: v6e:2x2x1
jax: 0.10.0
libtpu: 0.0.40
codegen_flags: <defaults>
</compile_context>

<pallas_src>
import jax
import jax.numpy as jnp
from jax.experimental import pallas as pl
from jax.experimental.pallas import tpu as pltpu


# ----------------------------------------------------------------------------
# Fused kernel: conv(3x3,pad=1)+bias+ReLU + Flatten + Linear + argmax, 1 shot.
# ----------------------------------------------------------------------------
def _gradcam_fused_kernel(cols_ref, wcol_ref, cb_ref, fcw_ref, fcb_ref,
                          conv_ref, logits_ref, pred_ref):
    # cols_ref  : (9*Cin, N*HW) bf16   im2col slab, batch folded onto lanes
    # wcol_ref  : (Cout, 9*Cin) bf16   conv weights, taps folded into K
    # cb_ref    : (Cout, 1)     f32    conv bias
    # fcw_ref   : (Cout, HW, C) bf16   classifier weights (channel-major flatten)
    # fcb_ref   : (1, C)        f32    classifier bias
    # conv_ref  : (N, Cout, HW) f32    conv+ReLU activations (lane-dense)
    # logits_ref: (N, C)        f32
    # pred_ref  : (1, 1)        i32    argmax over the flattened logits
    N, Cout, HW = conv_ref.shape
    C = logits_ref.shape[1]

    # Conv as a single K=36 GEMM with N*HW (=512) on the lane axis.
    acc = jnp.dot(wcol_ref[...], cols_ref[...],
                  preferred_element_type=jnp.float32)            # (Cout, N*HW)
    conv_all = jnp.maximum(acc + cb_ref[...], 0.0)               # f32 epilogue

    # conv_result: unmasked, lane-dense (Cout, HW) stores per batch element.
    for n in range(N):
        conv_ref[n] = conv_all[:, n * HW:(n + 1) * HW].astype(conv_ref.dtype)

    # Classifier: for each conv channel, a proper-M (N,HW)@(HW,C) bf16 matmul;
    # the Cout partial products are independent (MXU pushes can issue
    # back-to-back) and combined with a tree sum.
    parts = []
    for co in range(Cout):
        rows = [conv_all[co:co + 1, n * HW:(n + 1) * HW] for n in range(N)]
        lhs_co = jnp.concatenate(rows, axis=0).astype(jnp.bfloat16)   # (N, HW)
        parts.append(jnp.dot(lhs_co, fcw_ref[co],
                             preferred_element_type=jnp.float32))     # (N, C)
    while len(parts) > 1:
        nxt = [parts[i] + parts[i + 1] for i in range(0, len(parts) - 1, 2)]
        if len(parts) % 2:
            nxt.append(parts[-1])
        parts = nxt
    logits_all = fcb_ref[...] + parts[0]                         # (N, C) f32
    logits_ref[...] = logits_all.astype(logits_ref.dtype)

    # prediction = argmax over the flattened (N*C) logits, faithful to
    # PyTorch's x.argmax() (batch-global; lowest flat index wins ties).
    row = jax.lax.broadcasted_iota(jnp.int32, (N, C), 0)
    col = jax.lax.broadcasted_iota(jnp.int32, (N, C), 1)
    flat_idx = row * C + col
    maxv = jnp.max(jnp.max(logits_all, axis=1, keepdims=True),
                   axis=0, keepdims=True)                        # (1, 1)
    cand = jnp.where(logits_all == maxv, flat_idx, jnp.int32(N * C))
    pred = jnp.min(jnp.min(cand, axis=1, keepdims=True),
                   axis=0, keepdims=True)                        # (1, 1) i32
    pred_ref[...] = pred


def _gradcam_pallas(cols, w_col, conv_b_col, fc_w_r, fc_b_row, N):
    Cout, HW, C = fc_w_r.shape
    vmem = pl.BlockSpec(memory_space=pltpu.MemorySpace.VMEM)
    conv_flat, logits, pred = pl.pallas_call(
        _gradcam_fused_kernel,
        out_shape=(jax.ShapeDtypeStruct((N, Cout, HW), jnp.float32),
                   jax.ShapeDtypeStruct((N, C), jnp.float32),
                   jax.ShapeDtypeStruct((1, 1), jnp.int32)),
        in_specs=[vmem] * 5,
        out_specs=(vmem, vmem, vmem),
    )(cols, w_col, conv_b_col, fc_w_r, fc_b_row)
    return conv_flat, logits, pred


# ----------------------------------------------------------------------------
# One-time parameter preprocessing (outside the per-call hot path).
# ----------------------------------------------------------------------------
def prepare_params(conv_w_oihw, conv_b, fc_w, fc_b):
    Cout, Cin, kh, kw = conv_w_oihw.shape
    C = fc_w.shape[0]
    # (Cout,Cin,3,3) -> (Cout,3,3,Cin) -> (Cout, 9*Cin): tap-major K, matching
    # the im2col row order (tap*Cin + ci).  bf16 operands, f32 accumulation.
    w_col = (jnp.transpose(conv_w_oihw, (0, 2, 3, 1))
             .reshape(Cout, kh * kw * Cin).astype(jnp.bfloat16))
    conv_b_col = conv_b.reshape(Cout, 1).astype(jnp.float32)
    # PyTorch Linear weight is (C, Cout*H*W) over a channel-major flatten;
    # reorganize once to (Cout, HW, C) so the kernel contracts without fc_w.T.
    fc_w_r = fc_w.T.reshape(Cout, -1, C).astype(jnp.bfloat16)
    fc_b_row = fc_b.reshape(1, C).astype(jnp.float32)
    return w_col, conv_b_col, fc_w_r, fc_b_row


# ----------------------------------------------------------------------------
# Forward pass reproducing GradCamModel.forward
# ----------------------------------------------------------------------------
def grad_cam_forward(x_nchw, w_col, conv_b_col, fc_w_r, fc_b_row):
    """Returns (logits, conv_result_nchw, prediction)."""
    N, Cin, H, W = x_nchw.shape
    Cout = w_col.shape[0]
    HW = H * W
    # im2col, fused by XLA into one op: (9*Cin, N*HW) with tap-major rows and
    # the batch folded onto the lane (spatial) axis; bf16 halves the DMA bytes.
    xp = jnp.pad(x_nchw, ((0, 0), (0, 0), (1, 1), (1, 1)))
    taps = jnp.stack([xp[:, :, dy:dy + H, dx:dx + W]
                      for dy in range(3) for dx in range(3)], axis=0)
    cols = (jnp.transpose(taps, (0, 2, 1, 3, 4))          # (9, Cin, N, H, W)
            .reshape(3 * 3 * Cin, N * HW).astype(jnp.bfloat16))

    conv_flat, logits, pred = _gradcam_pallas(cols, w_col, conv_b_col,
                                              fc_w_r, fc_b_row, N)
    conv_result = conv_flat.reshape(N, Cout, H, W)   # free: already NCHW order
    prediction = pred[0, 0]                          # scalar, like x.argmax()
    return logits, conv_result, prediction


if __name__ == "__main__":
    N, Cin, H, W = 2, 4, 16, 16
    Cout, num_classes = 8, 10

    key = jax.random.PRNGKey(0)
    kx, kw1, kb1, kw2, kb2 = jax.random.split(key, 5)

    x = jax.random.normal(kx, (N, Cin, H, W), jnp.float32)
    conv_w = jax.random.normal(kw1, (Cout, Cin, 3, 3), jnp.float32) * 0.1
    conv_b = jax.random.normal(kb1, (Cout,), jnp.float32) * 0.1
    fc_w = jax.random.normal(kw2, (num_classes, Cout * H * W), jnp.float32) * 0.01
    fc_b = jax.random.normal(kb2, (num_classes,), jnp.float32) * 0.01

    # One-time weight reorganization (not in the per-call hot path).
    params = prepare_params(conv_w, conv_b, fc_w, fc_b)

    fwd = jax.jit(grad_cam_forward)
    logits, conv_result, prediction = fwd(x, *params)
    jax.block_until_ready((logits, conv_result, prediction))

    # Pure-JAX f32 reference (loose tolerance absorbs bf16 operand rounding).
    ref_conv = jax.lax.conv_general_dilated(
        x, conv_w, window_strides=(1, 1), padding=((1, 1), (1, 1)),
        dimension_numbers=("NCHW", "OIHW", "NCHW"),
        precision=jax.lax.Precision.HIGHEST)
    ref_conv = jnp.maximum(ref_conv + conv_b.reshape(1, Cout, 1, 1), 0.0)
    ref_logits = jnp.dot(ref_conv.reshape(N, -1), fc_w.T,
                         precision=jax.lax.Precision.HIGHEST) + fc_b

    assert logits.shape == (N, num_classes)
    assert conv_result.shape == (N, Cout, H, W)
    assert prediction.shape == ()
    assert bool(jnp.allclose(conv_result, ref_conv, atol=2e-2, rtol=2e-2))
    assert bool(jnp.allclose(logits, ref_logits, atol=2e-2, rtol=2e-2))
    # In-kernel argmax must agree exactly with argmax of the kernel's logits.
    assert int(prediction) == int(jnp.argmax(logits))
    print("KERNEL_OK")
</pallas_src>

<mosaic_0001>
module attributes {stable_mosaic.version = 11 : i64} {
  func.func @_gradcam_fused_kernel(%arg0: memref<36x512xbf16, #tpu.memory_space<vmem>>, %arg1: memref<8x36xbf16, #tpu.memory_space<vmem>>, %arg2: memref<8x1xf32, #tpu.memory_space<vmem>>, %arg3: memref<8x256x10xbf16, #tpu.memory_space<vmem>>, %arg4: memref<1x10xf32, #tpu.memory_space<vmem>>, %arg5: memref<2x8x256xf32, #tpu.memory_space<vmem>>, %arg6: memref<2x10xf32, #tpu.memory_space<vmem>>, %arg7: memref<1x1xi32, #tpu.memory_space<vmem>>) attributes {dimension_semantics = [], scalar_prefetch = 0 : i64, scratch_operands = 0 : i64, tpu.core_type = #tpu.core_type<tc>} {
    %c0 = arith.constant 0 : index
    %c0_0 = arith.constant 0 : index
    %0 = vector.load %arg1[%c0, %c0_0] : memref<8x36xbf16, #tpu.memory_space<vmem>>, vector<8x36xbf16>
    %c0_1 = arith.constant 0 : index
    %c0_2 = arith.constant 0 : index
    %1 = vector.load %arg0[%c0_1, %c0_2] : memref<36x512xbf16, #tpu.memory_space<vmem>>, vector<36x512xbf16>
    %cst = arith.constant dense<0.000000e+00> : vector<8x512xf32>
    %2 = tpu.matmul %0, %1, %cst {dimension_numbers = #tpu.dot_dimension_numbers<[1], [0], [0], [1], [0, 0, 1, 1], [], []>} : vector<8x36xbf16>, vector<36x512xbf16>, vector<8x512xf32> -> vector<8x512xf32>
    %c0_3 = arith.constant 0 : index
    %c0_4 = arith.constant 0 : index
    %3 = vector.load %arg2[%c0_3, %c0_4] : memref<8x1xf32, #tpu.memory_space<vmem>>, vector<8x1xf32>
    %4 = vector.broadcast %3 : vector<8x1xf32> to vector<8x512xf32>
    %5 = arith.addf %2, %4 : vector<8x512xf32>
    %cst_5 = arith.constant 0.000000e+00 : f32
    %6 = vector.broadcast %cst_5 : f32 to vector<8x512xf32>
    %7 = arith.maximumf %5, %6 : vector<8x512xf32>
    %8 = vector.extract_strided_slice %7 {offsets = [0, 0], sizes = [8, 256], strides = [1, 1]} : vector<8x512xf32> to vector<8x256xf32>
    %c0_6 = arith.constant 0 : index
    %c0_7 = arith.constant 0 : index
    %c0_8 = arith.constant 0 : index
    %9 = vector.load %arg5[%c0_6, %c0_7, %c0_8] : memref<2x8x256xf32, #tpu.memory_space<vmem>>, vector<1x8x256xf32>
    %10 = vector.shape_cast %9 : vector<1x8x256xf32> to vector<8x256xf32>
    %11 = vector.shape_cast %8 : vector<8x256xf32> to vector<1x8x256xf32>
    tpu.vector_store %arg5[%c0_6, %c0_7, %c0_8], %11 {strides = array<i32>} : memref<2x8x256xf32, #tpu.memory_space<vmem>>, vector<1x8x256xf32>,
    %12 = vector.extract_strided_slice %7 {offsets = [0, 256], sizes = [8, 256], strides = [1, 1]} : vector<8x512xf32> to vector<8x256xf32>
    %c1 = arith.constant 1 : index
    %c0_9 = arith.constant 0 : index
    %c0_10 = arith.constant 0 : index
    %13 = vector.load %arg5[%c1, %c0_9, %c0_10] : memref<2x8x256xf32, #tpu.memory_space<vmem>>, vector<1x8x256xf32>
    %14 = vector.shape_cast %13 : vector<1x8x256xf32> to vector<8x256xf32>
    %15 = vector.shape_cast %12 : vector<8x256xf32> to vector<1x8x256xf32>
    tpu.vector_store %arg5[%c1, %c0_9, %c0_10], %15 {strides = array<i32>} : memref<2x8x256xf32, #tpu.memory_space<vmem>>, vector<1x8x256xf32>,
    %16 = vector.extract_strided_slice %7 {offsets = [0, 0], sizes = [1, 256], strides = [1, 1]} : vector<8x512xf32> to vector<1x256xf32>
    %17 = vector.extract_strided_slice %7 {offsets = [0, 256], sizes = [1, 256], strides = [1, 1]} : vector<8x512xf32> to vector<1x256xf32>
    %18 = tpu.concatenate %16, %17 in 0 : vector<1x256xf32>, vector<1x256xf32> -> vector<2x256xf32>
    %19 = arith.truncf %18 : vector<2x256xf32> to vector<2x256xbf16>
    %c0_11 = arith.constant 0 : index
    %c0_12 = arith.constant 0 : index
    %c0_13 = arith.constant 0 : index
    %20 = vector.load %arg3[%c0_11, %c0_12, %c0_13] : memref<8x256x10xbf16, #tpu.memory_space<vmem>>, vector<1x256x10xbf16>
    %21 = vector.shape_cast %20 : vector<1x256x10xbf16> to vector<256x10xbf16>
    %cst_14 = arith.constant dense<0.000000e+00> : vector<2x10xf32>
    %22 = tpu.matmul %19, %21, %cst_14 {dimension_numbers = #tpu.dot_dimension_numbers<[1], [0], [0], [1], [0, 0, 1, 1], [], []>} : vector<2x256xbf16>, vector<256x10xbf16>, vector<2x10xf32> -> vector<2x10xf32>
    %23 = vector.extract_strided_slice %7 {offsets = [1, 0], sizes = [1, 256], strides = [1, 1]} : vector<8x512xf32> to vector<1x256xf32>
    %24 = vector.extract_strided_slice %7 {offsets = [1, 256], sizes = [1, 256], strides = [1, 1]} : vector<8x512xf32> to vector<1x256xf32>
    %25 = tpu.concatenate %23, %24 in 0 : vector<1x256xf32>, vector<1x256xf32> -> vector<2x256xf32>
    %26 = arith.truncf %25 : vector<2x256xf32> to vector<2x256xbf16>
    %c1_15 = arith.constant 1 : index
    %c0_16 = arith.constant 0 : index
    %c0_17 = arith.constant 0 : index
    %27 = vector.load %arg3[%c1_15, %c0_16, %c0_17] : memref<8x256x10xbf16, #tpu.memory_space<vmem>>, vector<1x256x10xbf16>
    %28 = vector.shape_cast %27 : vector<1x256x10xbf16> to vector<256x10xbf16>
    %cst_18 = arith.constant dense<0.000000e+00> : vector<2x10xf32>
    %29 = tpu.matmul %26, %28, %cst_18 {dimension_numbers = #tpu.dot_dimension_numbers<[1], [0], [0], [1], [0, 0, 1, 1], [], []>} : vector<2x256xbf16>, vector<256x10xbf16>, vector<2x10xf32> -> vector<2x10xf32>
    %30 = vector.extract_strided_slice %7 {offsets = [2, 0], sizes = [1, 256], strides = [1, 1]} : vector<8x512xf32> to vector<1x256xf32>
    %31 = vector.extract_strided_slice %7 {offsets = [2, 256], sizes = [1, 256], strides = [1, 1]} : vector<8x512xf32> to vector<1x256xf32>
    %32 = tpu.concatenate %30, %31 in 0 : vector<1x256xf32>, vector<1x256xf32> -> vector<2x256xf32>
    %33 = arith.truncf %32 : vector<2x256xf32> to vector<2x256xbf16>
    %c2 = arith.constant 2 : index
    %c0_19 = arith.constant 0 : index
    %c0_20 = arith.constant 0 : index
    %34 = vector.load %arg3[%c2, %c0_19, %c0_20] : memref<8x256x10xbf16, #tpu.memory_space<vmem>>, vector<1x256x10xbf16>
    %35 = vector.shape_cast %34 : vector<1x256x10xbf16> to vector<256x10xbf16>
    %cst_21 = arith.constant dense<0.000000e+00> : vector<2x10xf32>
    %36 = tpu.matmul %33, %35, %cst_21 {dimension_numbers = #tpu.dot_dimension_numbers<[1], [0], [0], [1], [0, 0, 1, 1], [], []>} : vector<2x256xbf16>, vector<256x10xbf16>, vector<2x10xf32> -> vector<2x10xf32>
    %37 = vector.extract_strided_slice %7 {offsets = [3, 0], sizes = [1, 256], strides = [1, 1]} : vector<8x512xf32> to vector<1x256xf32>
    %38 = vector.extract_strided_slice %7 {offsets = [3, 256], sizes = [1, 256], strides = [1, 1]} : vector<8x512xf32> to vector<1x256xf32>
    %39 = tpu.concatenate %37, %38 in 0 : vector<1x256xf32>, vector<1x256xf32> -> vector<2x256xf32>
    %40 = arith.truncf %39 : vector<2x256xf32> to vector<2x256xbf16>
    %c3 = arith.constant 3 : index
    %c0_22 = arith.constant 0 : index
    %c0_23 = arith.constant 0 : index
    %41 = vector.load %arg3[%c3, %c0_22, %c0_23] : memref<8x256x10xbf16, #tpu.memory_space<vmem>>, vector<1x256x10xbf16>
    %42 = vector.shape_cast %41 : vector<1x256x10xbf16> to vector<256x10xbf16>
    %cst_24 = arith.constant dense<0.000000e+00> : vector<2x10xf32>
    %43 = tpu.matmul %40, %42, %cst_24 {dimension_numbers = #tpu.dot_dimension_numbers<[1], [0], [0], [1], [0, 0, 1, 1], [], []>} : vector<2x256xbf16>, vector<256x10xbf16>, vector<2x10xf32> -> vector<2x10xf32>
    %44 = vector.extract_strided_slice %7 {offsets = [4, 0], sizes = [1, 256], strides = [1, 1]} : vector<8x512xf32> to vector<1x256xf32>
    %45 = vector.extract_strided_slice %7 {offsets = [4, 256], sizes = [1, 256], strides = [1, 1]} : vector<8x512xf32> to vector<1x256xf32>
    %46 = tpu.concatenate %44, %45 in 0 : vector<1x256xf32>, vector<1x256xf32> -> vector<2x256xf32>
    %47 = arith.truncf %46 : vector<2x256xf32> to vector<2x256xbf16>
    %c4 = arith.constant 4 : index
    %c0_25 = arith.constant 0 : index
    %c0_26 = arith.constant 0 : index
    %48 = vector.load %arg3[%c4, %c0_25, %c0_26] : memref<8x256x10xbf16, #tpu.memory_space<vmem>>, vector<1x256x10xbf16>
    %49 = vector.shape_cast %48 : vector<1x256x10xbf16> to vector<256x10xbf16>
    %cst_27 = arith.constant dense<0.000000e+00> : vector<2x10xf32>
    %50 = tpu.matmul %47, %49, %cst_27 {dimension_numbers = #tpu.dot_dimension_numbers<[1], [0], [0], [1], [0, 0, 1, 1], [], []>} : vector<2x256xbf16>, vector<256x10xbf16>, vector<2x10xf32> -> vector<2x10xf32>
    %51 = vector.extract_strided_slice %7 {offsets = [5, 0], sizes = [1, 256], strides = [1, 1]} : vector<8x512xf32> to vector<1x256xf32>
    %52 = vector.extract_strided_slice %7 {offsets = [5, 256], sizes = [1, 256], strides = [1, 1]} : vector<8x512xf32> to vector<1x256xf32>
    %53 = tpu.concatenate %51, %52 in 0 : vector<1x256xf32>, vector<1x256xf32> -> vector<2x256xf32>
    %54 = arith.truncf %53 : vector<2x256xf32> to vector<2x256xbf16>
    %c5 = arith.constant 5 : index
    %c0_28 = arith.constant 0 : index
    %c0_29 = arith.constant 0 : index
    %55 = vector.load %arg3[%c5, %c0_28, %c0_29] : memref<8x256x10xbf16, #tpu.memory_space<vmem>>, vector<1x256x10xbf16>
    %56 = vector.shape_cast %55 : vector<1x256x10xbf16> to vector<256x10xbf16>
    %cst_30 = arith.constant dense<0.000000e+00> : vector<2x10xf32>
    %57 = tpu.matmul %54, %56, %cst_30 {dimension_numbers = #tpu.dot_dimension_numbers<[1], [0], [0], [1], [0, 0, 1, 1], [], []>} : vector<2x256xbf16>, vector<256x10xbf16>, vector<2x10xf32> -> vector<2x10xf32>
    %58 = vector.extract_strided_slice %7 {offsets = [6, 0], sizes = [1, 256], strides = [1, 1]} : vector<8x512xf32> to vector<1x256xf32>
    %59 = vector.extract_strided_slice %7 {offsets = [6, 256], sizes = [1, 256], strides = [1, 1]} : vector<8x512xf32> to vector<1x256xf32>
    %60 = tpu.concatenate %58, %59 in 0 : vector<1x256xf32>, vector<1x256xf32> -> vector<2x256xf32>
    %61 = arith.truncf %60 : vector<2x256xf32> to vector<2x256xbf16>
    %c6 = arith.constant 6 : index
    %c0_31 = arith.constant 0 : index
    %c0_32 = arith.constant 0 : index
    %62 = vector.load %arg3[%c6, %c0_31, %c0_32] : memref<8x256x10xbf16, #tpu.memory_space<vmem>>, vector<1x256x10xbf16>
    %63 = vector.shape_cast %62 : vector<1x256x10xbf16> to vector<256x10xbf16>
    %cst_33 = arith.constant dense<0.000000e+00> : vector<2x10xf32>
    %64 = tpu.matmul %61, %63, %cst_33 {dimension_numbers = #tpu.dot_dimension_numbers<[1], [0], [0], [1], [0, 0, 1, 1], [], []>} : vector<2x256xbf16>, vector<256x10xbf16>, vector<2x10xf32> -> vector<2x10xf32>
    %65 = vector.extract_strided_slice %7 {offsets = [7, 0], sizes = [1, 256], strides = [1, 1]} : vector<8x512xf32> to vector<1x256xf32>
    %66 = vector.extract_strided_slice %7 {offsets = [7, 256], sizes = [1, 256], strides = [1, 1]} : vector<8x512xf32> to vector<1x256xf32>
    %67 = tpu.concatenate %65, %66 in 0 : vector<1x256xf32>, vector<1x256xf32> -> vector<2x256xf32>
    %68 = arith.truncf %67 : vector<2x256xf32> to vector<2x256xbf16>
    %c7 = arith.constant 7 : index
    %c0_34 = arith.constant 0 : index
    %c0_35 = arith.constant 0 : index
    %69 = vector.load %arg3[%c7, %c0_34, %c0_35] : memref<8x256x10xbf16, #tpu.memory_space<vmem>>, vector<1x256x10xbf16>
    %70 = vector.shape_cast %69 : vector<1x256x10xbf16> to vector<256x10xbf16>
    %cst_36 = arith.constant dense<0.000000e+00> : vector<2x10xf32>
    %71 = tpu.matmul %68, %70, %cst_36 {dimension_numbers = #tpu.dot_dimension_numbers<[1], [0], [0], [1], [0, 0, 1, 1], [], []>} : vector<2x256xbf16>, vector<256x10xbf16>, vector<2x10xf32> -> vector<2x10xf32>
    %72 = arith.addf %22, %29 : vector<2x10xf32>
    %73 = arith.addf %36, %43 : vector<2x10xf32>
    %74 = arith.addf %50, %57 : vector<2x10xf32>
    %75 = arith.addf %64, %71 : vector<2x10xf32>
    %76 = arith.addf %72, %73 : vector<2x10xf32>
    %77 = arith.addf %74, %75 : vector<2x10xf32>
    %78 = arith.addf %76, %77 : vector<2x10xf32>
    %c0_37 = arith.constant 0 : index
    %c0_38 = arith.constant 0 : index
    %79 = vector.load %arg4[%c0_37, %c0_38] : memref<1x10xf32, #tpu.memory_space<vmem>>, vector<1x10xf32>
    %80 = vector.broadcast %79 : vector<1x10xf32> to vector<2x10xf32>
    %81 = arith.addf %80, %78 : vector<2x10xf32>
    %c0_39 = arith.constant 0 : index
    %c0_40 = arith.constant 0 : index
    %82 = vector.load %arg6[%c0_39, %c0_40] : memref<2x10xf32, #tpu.memory_space<vmem>>, vector<2x10xf32>
    tpu.vector_store %arg6[%c0_39, %c0_40], %81 {strides = array<i32>} : memref<2x10xf32, #tpu.memory_space<vmem>>, vector<2x10xf32>,
    %83 = tpu.iota {dimensions = array<i32: 0>} : vector<2x10xi32>
    %84 = tpu.iota {dimensions = array<i32: 1>} : vector<2x10xi32>
    %c10_i32 = arith.constant 10 : i32
    %85 = vector.broadcast %c10_i32 : i32 to vector<2x10xi32>
    %86 = arith.muli %83, %85 : vector<2x10xi32>
    %87 = arith.addi %86, %84 : vector<2x10xi32>
    %cst_41 = arith.constant dense<0xFF800000> : vector<2xf32>
    %88 = vector.multi_reduction <maximumf>, %81, %cst_41 [1] : vector<2x10xf32> to vector<2xf32>
    %89 = vector.shape_cast %88 : vector<2xf32> to vector<2x1xf32>
    %cst_42 = arith.constant dense<0xFF800000> : vector<1xf32>
    %90 = vector.multi_reduction <maximumf>, %89, %cst_42 [0] : vector<2x1xf32> to vector<1xf32>
    %91 = vector.shape_cast %90 : vector<1xf32> to vector<1x1xf32>
    %92 = vector.broadcast %91 : vector<1x1xf32> to vector<2x10xf32>
    %93 = arith.cmpf oeq, %81, %92 : vector<2x10xf32>
    %c20_i32 = arith.constant 20 : i32
    %94 = vector.broadcast %c20_i32 : i32 to vector<2x10xi32>
    %95 = arith.select %93, %87, %94 : vector<2x10xi1>, vector<2x10xi32>
    %cst_43 = arith.constant dense<2147483647> : vector<2xi32>
    %96 = vector.multi_reduction <minsi>, %95, %cst_43 [1] : vector<2x10xi32> to vector<2xi32>
    %97 = vector.shape_cast %96 : vector<2xi32> to vector<2x1xi32>
    %cst_44 = arith.constant dense<2147483647> : vector<1xi32>
    %98 = vector.multi_reduction <minsi>, %97, %cst_44 [0] : vector<2x1xi32> to vector<1xi32>
    %99 = vector.shape_cast %98 : vector<1xi32> to vector<1x1xi32>
    %c0_45 = arith.constant 0 : index
    %c0_46 = arith.constant 0 : index
    %100 = vector.load %arg7[%c0_45, %c0_46] : memref<1x1xi32, #tpu.memory_space<vmem>>, vector<1x1xi32>
    tpu.vector_store %arg7[%c0_45, %c0_46], %99 {strides = array<i32>} : memref<1x1xi32, #tpu.memory_space<vmem>>, vector<1x1xi32>,
    return
  }
}

</mosaic_0001>

<bundles_post_ra>
// kernel: grad_cam_forward.1
= control target key start
LH: loop header
LB: loop body
LE: loop exit
PB: predicated region body
PF: predicated region fallthrough
CT: control target
= control target key end

     0   :  { %13 = vsyncpa [#allocation3], 0  ;;  %vm97_vm0 = vcmask 1041408   ;;  %v2474_v16 = vmov 0   ;;  %vm93_vm1 = vcmask 293888   ;;  %s3051_s0 = inlined_call_operand.vmem [shape: bf16[36,512], index: 0, kind: input, shape index: {}]   ;;  %s3052_s1 = inlined_call_operand.vmem [shape: bf16[8,36], index: 1, kind: input, shape index: {}]   ;;  %s3053_s2 = inlined_call_operand.vmem [shape: f32[8,1], index: 2, kind: input, shape index: {}]   ;;  %s3054_s3 = inlined_call_operand.vmem [shape: bf16[8,256,10], index: 3, kind: input, shape index: {}]   ;;  %s3055_s4 = inlined_call_operand.vmem [shape: f32[1,10], index: 4, kind: input, shape index: {}]   ;;  %s3056_s5 = inlined_call_operand.vmem [shape: f32[2,8,256], index: 5, kind: output, shape index: {0}]   ;;  %s3057_s6 = inlined_call_operand.hbm [shape: f32[2,10], index: 6, kind: output, shape index: {1}]   ;;  %s3058_s7 = inlined_call_operand.hbm [shape: s32[1,1], index: 7, kind: output, shape index: {2}]  }
   0x1   :  { %v35_v0 = vld [vmem:[%s3051_s0 + $0x40] sm:$0x33]  ;;  %v36_v1 = vld [vmem:[%s3051_s0 + $0x48] sm:$0x33]  ;;  %142 = vmatprep.mubr.bf16.mxu0 %v2474_v16  ;;  %183 = vmatprep.mubr.bf16.mxu1 %v2474_v16  ;;  %v2302_v18 = vld [vmem:[%s3054_s3 + $0xf8] sm:$0xff]  }
   0x2   :  { %v1744_v2 = vcombine.high %v35_v0, %v35_v0  ;;  %v1746_v3 = vcombine.high %v36_v1, %v36_v1  ;;  %v1743_v4 = vcombine.low %v35_v0, %v35_v0  ;;  %v1745_v5 = vcombine.low %v36_v1, %v36_v1  ;;  %v2290_v6 = vld [vmem:[%s3051_s0 + $0x24] ss:$16 sps:$4 sm:$0xff]   ;;  %v2292_v7 = vld [vmem:[%s3051_s0 + $0x2c] ss:$16 sps:$4 sm:$0xff]   ;;  %v2294_v8 = vld [vmem:[%s3051_s0 + $0x20] ss:$16 sps:$4 sm:$0xff]   ;;  %2285 = vset.pattern.permute.xlu0 %v2474_v16 }
   0x3   :  { %v2295_v11 = vld [vmem:[%s3051_s0 + $0x28] ss:$16 sps:$4 sm:$0xff]   ;;  %v2296_v12 = vld [vmem:[%s3051_s0 + $0x4] ss:$16 sps:$4 sm:$0xff]   ;;  %v2298_v13 = vld [vmem:[%s3051_s0 + $0xc] ss:$16 sps:$4 sm:$0xff]  }
   0x4   :  { %1747 = vmatprep.subr.msk.bf16.mxu0 %vm97_vm0, %v1744_v2  ;;  %1749 = vmatprep.subr.msk.bf16.mxu1 %vm97_vm0, %v1746_v3  ;;  %v99_v9 = vsel %vm97_vm0, %v1743_v4, 0  ;;  %v105_v10 = vsel %vm97_vm0, %v1745_v5, 0  ;;  %v2300_v14 = vld [vmem:[%s3051_s0] ss:$16 sps:$4 sm:$0xff]   ;;  %v2301_v15 = vld [vmem:[%s3051_s0 + $0x8] ss:$16 sps:$4 sm:$0xff]  }
   0x5   :  { %121 = vmatpush1.bf16.msra.mxu0 %v99_v9  ;;  %162 = vmatpush1.bf16.msra.mxu1 %v105_v10  ;;  %v37_v17 = vld [vmem:[%s3053_s2] sm:$0xff]  ;;  %v2303_v19 = vld [vmem:[%s3054_s3 + $0x1f8] sm:$0xff]   ;;  %v2306_v23 = vld [vmem:[%s3054_s3 + $0xf0] sm:$0xff]  }
   0x6   :  { %122 = vmatprep.subr.bf16.mxu0 %v2290_v6  ;;  %163 = vmatprep.subr.bf16.mxu1 %v2292_v7  ;;  %v26_v20 = vld [vmem:[%s3052_s1] sm:$0xf]  ;;  %v2304_v21 = vld [vmem:[%s3054_s3 + $0xb8] sm:$0xff]   ;;  %v2307_v24 = vld [vmem:[%s3054_s3 + $0x1f0] sm:$0xff]  }
   0x7   :  { %40 = vperm.xlu0 %2285, %v37_v17   ;;  %v2305_v22 = vld [vmem:[%s3054_s3 + $0x1b8] sm:$0xff]   ;;  %v2308_v25 = vld [vmem:[%s3054_s3 + $0xb0] sm:$0xff]   ;;  %v2310_v27 = vld [vmem:[%s3054_s3 + $0xe8] sm:$0xff]  }
   0x8   :  { %v2309_v26 = vld [vmem:[%s3054_s3 + $0x1b0] sm:$0xff]   ;;  %v2311_v28 = vld [vmem:[%s3054_s3 + $0x1e8] sm:$0xff]   ;;  %v2314_v31 = vld [vmem:[%s3054_s3 + $0xe0] sm:$0xff]  }
   0x9   :  { %123 = vmatpush1.bf16.msra.mxu0 %v2294_v8  ;;  %164 = vmatpush1.bf16.msra.mxu1 %v2295_v11  ;;  %v2312_v29 = vld [vmem:[%s3054_s3 + $0xa8] sm:$0xff]   ;;  %v2315_v32 = vld [vmem:[%s3054_s3 + $0x1e0] sm:$0xff]   ;;  %v2318_v35 = vld [vmem:[%s3054_s3 + $0xd8] sm:$0xff]  }
   0xa   :  { %124 = vmatprep.subr.bf16.mxu0 %v2296_v12  ;;  %165 = vmatprep.subr.bf16.mxu1 %v2298_v13  ;;  %v2313_v30 = vld [vmem:[%s3054_s3 + $0x1a8] sm:$0xff]   ;;  %v2316_v33 = vld [vmem:[%s3054_s3 + $0xa0] sm:$0xff]   ;;  %v2319_v36 = vld [vmem:[%s3054_s3 + $0x1d8] sm:$0xff]  }
   0xb   :  { %v2317_v34 = vld [vmem:[%s3054_s3 + $0x1a0] sm:$0xff]   ;;  %v2320_v37 = vld [vmem:[%s3054_s3 + $0x98] sm:$0xff]   ;;  %v2322_v39 = vld [vmem:[%s3054_s3 + $0xd0] sm:$0xff]  }
   0xc   :  { %v2321_v38 = vld [vmem:[%s3054_s3 + $0x198] sm:$0xff]   ;;  %v2323_v40 = vld [vmem:[%s3054_s3 + $0x1d0] sm:$0xff]   ;;  %v2326_v43 = vld [vmem:[%s3054_s3 + $0xc8] sm:$0xff]  }
   0xd   :  { %125 = vmatpush1.bf16.msra.mxu0 %v2300_v14  ;;  %166 = vmatpush1.bf16.msra.mxu1 %v2301_v15  ;;  %v2324_v41 = vld [vmem:[%s3054_s3 + $0x90] sm:$0xff]   ;;  %v2327_v44 = vld [vmem:[%s3054_s3 + $0x1c8] sm:$0xff]   ;;  %v2330_v47 = vld [vmem:[%s3054_s3 + $0xc0] sm:$0xff]  }
   0xe   :  { %2106 = vmatprep.subr.bf16.mxu0 %v2302_v18  ;;  %2128 = vmatprep.subr.bf16.mxu1 %v2303_v19  ;;  %v2325_v42 = vld [vmem:[%s3054_s3 + $0x190] sm:$0xff]   ;;  %v2328_v45 = vld [vmem:[%s3054_s3 + $0x88] sm:$0xff]   ;;  %v2331_v48 = vld [vmem:[%s3054_s3 + $0x1c0] sm:$0xff]  }
   0xf   :  { %v2329_v46 = vld [vmem:[%s3054_s3 + $0x188] sm:$0xff]   ;;  %v2332_v49 = vld [vmem:[%s3054_s3 + $0x80] sm:$0xff]   ;;  %v2334_v51 = vld [vmem:[%s3054_s3 + $0x2f8] sm:$0xff]  }
  0x10   :  { %1748 = vmatmul.mubr.msk.bf16.vlgmr.msra.gmra.mxu0 %vm93_vm1, %v26_v20  ;;  %1750 = vmatmul.mubr.msk.bf16.vlgmr.msra.gmra.mxu1 %vm93_vm1, %v26_v20  ;;  %v2333_v50 = vld [vmem:[%s3054_s3 + $0x180] sm:$0xff]   ;;  %v2335_v52 = vld [vmem:[%s3054_s3 + $0x3f8] sm:$0xff]  }
  0x11   :  { %2107 = vmatpush3.bf16.msra.mxu0 %v2304_v21  ;;  %2129 = vmatpush3.bf16.msra.mxu1 %v2305_v22 }
  0x12   :  { %2108 = vmatprep.subr.bf16.mxu0 %v2306_v23  ;;  %2130 = vmatprep.subr.bf16.mxu1 %v2307_v24 }
  0x15   :  { %2109 = vmatpush3.bf16.msra.mxu0 %v2308_v25  ;;  %2131 = vmatpush3.bf16.msra.mxu1 %v2309_v26 }
  0x16   :  { %2110 = vmatprep.subr.bf16.mxu0 %v2310_v27  ;;  %2132 = vmatprep.subr.bf16.mxu1 %v2311_v28 }
  0x19   :  { %2111 = vmatpush3.bf16.msra.mxu0 %v2312_v29  ;;  %2133 = vmatpush3.bf16.msra.mxu1 %v2313_v30 }
  0x1a   :  { %2112 = vmatprep.subr.bf16.mxu0 %v2314_v31  ;;  %2134 = vmatprep.subr.bf16.mxu1 %v2315_v32 }
  0x1d   :  { %2113 = vmatpush3.bf16.msra.mxu0 %v2316_v33  ;;  %2135 = vmatpush3.bf16.msra.mxu1 %v2317_v34 }
  0x1e   :  { %2114 = vmatprep.subr.bf16.mxu0 %v2318_v35  ;;  %2136 = vmatprep.subr.bf16.mxu1 %v2319_v36 }
  0x21   :  { %2115 = vmatpush3.bf16.msra.mxu0 %v2320_v37  ;;  %2137 = vmatpush3.bf16.msra.mxu1 %v2321_v38 }
  0x22   :  { %2116 = vmatprep.subr.bf16.mxu0 %v2322_v39  ;;  %2138 = vmatprep.subr.bf16.mxu1 %v2323_v40 }
  0x25   :  { %2117 = vmatpush3.bf16.msra.mxu0 %v2324_v41  ;;  %2139 = vmatpush3.bf16.msra.mxu1 %v2325_v42 }
  0x26   :  { %2118 = vmatprep.subr.bf16.mxu0 %v2326_v43  ;;  %2140 = vmatprep.subr.bf16.mxu1 %v2327_v44 }
  0x29   :  { %2119 = vmatpush3.bf16.msra.mxu0 %v2328_v45  ;;  %2141 = vmatpush3.bf16.msra.mxu1 %v2329_v46 }
  0x2a   :  { %2120 = vmatprep.subr.bf16.mxu0 %v2330_v47  ;;  %2142 = vmatprep.subr.bf16.mxu1 %v2331_v48 }
  0x2d   :  { %2121 = vmatpush3.bf16.msra.mxu0 %v2332_v49  ;;  %2143 = vmatpush3.bf16.msra.mxu1 %v2333_v50 }
  0x2e   :  { %2150 = vmatprep.subr.bf16.mxu0 %v2334_v51  ;;  %2172 = vmatprep.subr.bf16.mxu1 %v2335_v52 }
  0x2f   :  { %14 = vsyncpa [#allocation5], 0  ;;  %vm207_vm2 = vcmask 1040384   ;;  %v2336_v21 = vld [vmem:[%s3054_s3 + $0x2b8] sm:$0xff]   ;;  %v2338_v28 = vld [vmem:[%s3054_s3 + $0x2f0] sm:$0xff]   ;;  %vm1656_vm3 = vcmask 74752  }
  0x30   :  { %v2337_v22 = vld [vmem:[%s3054_s3 + $0x3b8] sm:$0xff]   ;;  %v2339_v29 = vld [vmem:[%s3054_s3 + $0x3f0] sm:$0xff]   ;;  %v2342_v36 = vld [vmem:[%s3054_s3 + $0x2e8] sm:$0xff]  }
  0x31   :  { %v2340_v33 = vld [vmem:[%s3054_s3 + $0x2b0] sm:$0xff]   ;;  %v2343_v37 = vld [vmem:[%s3054_s3 + $0x3e8] sm:$0xff]  }
  0x32   :  { %v2341_v34 = vld [vmem:[%s3054_s3 + $0x3b0] sm:$0xff]   ;;  %v2344_v48 = vld [vmem:[%s3054_s3 + $0x2a8] sm:$0xff]  }
  0x33   :  { %v2345_v49 = vld [vmem:[%s3054_s3 + $0x3a8] sm:$0xff]  }
  0x82   :  { %v41_v53 = vpop.permute.xlu0 %40 }
  0xd0   :  { %v144_v54 = vpop.f32.mrf.mxu0  ;;  %v185_v55 = vpop.f32.mrf.mxu1 }
  0xd1   :  { %v145_v56 = vadd.f32 %v144_v54, %v41_v53  ;;  %v186_v57 = vadd.f32 %v185_v55, %v41_v53  ;;  %v2347_v54 = vld [vmem:[%s3054_s3 + $0x3e0] sm:$0xff]  }
  0xd2   :  { %v146_v58 = vpop.f32.mrf.mxu0  ;;  %v187_v59 = vpop.f32.mrf.mxu1 }
  0xd3   :  { %v2659_v60 = vmax.f32 %v145_v56, 0.0  ;;  %v2661_v61 = vmax.f32 %v186_v57, 0.0  ;;  %v147_v62 = vadd.f32 %v146_v58, %v41_v53  ;;  %v188_v63 = vadd.f32 %v187_v59, %v41_v53  ;;  %v2346_v53 = vld [vmem:[%s3054_s3 + $0x2e0] sm:$0xff]   ;;  %v2350_v59 = vld [vmem:[%s3054_s3 + $0x2d8] sm:$0xff]  }
  0xd4   :  { %v148_v0 = vpop.f32.mrf.mxu0  ;;  %v189_v1 = vpop.f32.mrf.mxu1  ;;  %v2348_v57 = vld [vmem:[%s3054_s3 + $0x2a0] sm:$0xff]  }
  0xd5   :  { %196 = vst [vmem:[%s3056_s5] sm:$0xff] %v2659_v60  ;;  %1751 = vst [vmem:[%s3056_s5 + $0x10] sm:$0xff] %v2661_v61  ;;  %v2671_v2 = vmax.f32 %v147_v62, 0.0  ;;  %v2673_v3 = vmax.f32 %v188_v63, 0.0  ;;  %v246_v4 = vrot.slane %v2659_v60, 1  ;;  %v468_v5 = vrot.slane %v2659_v60, 3  ;;  %v2349_v58 = vld [vmem:[%s3054_s3 + $0x3a0] sm:$0xff]  }
  0xd6   :  { %v149_v6 = vpop.f32.mrf.mxu0  ;;  %v190_v7 = vpop.f32.mrf.mxu1  ;;  %v472_v8 = vrot.slane %v2661_v61, 2  ;;  %v203_v32 = vrot.slane %v2661_v61, 7  ;;  %v423_v35 = vrot.slane %v2659_v60, 2  ;;  %v427_v39 = vrot.slane %v2661_v61, 1  ;;  %v2351_v62 = vld [vmem:[%s3054_s3 + $0x3d8] sm:$0xff]   ;;  %v2354_v1 = vld [vmem:[%s3054_s3 + $0x2d0] sm:$0xff]  }
  0xd7   :  { %197 = vst [vmem:[%s3056_s5 + $0x8] sm:$0xff] %v2671_v2  ;;  %1752 = vst [vmem:[%s3056_s5 + $0x18] sm:$0xff] %v2673_v3  ;;  %v247_v9 = vrot.slane %v2671_v2, 1  ;;  %v469_v10 = vrot.slane %v2671_v2, 3  ;;  %v473_v11 = vrot.slane %v2673_v3, 2  ;;  %v250_v12 = vsel %vm207_vm2, %v246_v4, %v2661_v61  ;;  %v2352_v63 = vld [vmem:[%s3054_s3 + $0x298] sm:$0xff]  }
  0xd8   :  { %v476_v13 = vsel %vm207_vm2, %v468_v5, %v472_v8  ;;  %v695_v14 = vrot.slane %v2671_v2, 5  ;;  %v699_v15 = vrot.slane %v2673_v3, 4  ;;  %v921_v18 = vrot.slane %v2671_v2, 7  ;;  %v2353_v0 = vld [vmem:[%s3054_s3 + $0x398] sm:$0xff]   ;;  %v2355_v4 = vld [vmem:[%s3054_s3 + $0x3d0] sm:$0xff]   ;;  %v2358_v7 = vld [vmem:[%s3054_s3 + $0x2c8] sm:$0xff]  }
  0xd9   :  { %v251_v16 = vsel %vm207_vm2, %v247_v9, %v2673_v3  ;;  %v477_v17 = vsel %vm207_vm2, %v469_v10, %v473_v11  ;;  %v925_v24 = vrot.slane %v2673_v3, 6  ;;  %v252_v25 = vpack.c.bf16 %v250_v12, %v250_v12  ;;  %v2356_v5 = vld [vmem:[%s3054_s3 + $0x290] sm:$0xff]   ;;  %v2359_v8 = vld [vmem:[%s3054_s3 + $0x3c8] sm:$0xff]   ;;  %v2362_v11 = vld [vmem:[%s3054_s3 + $0x2c0] sm:$0xff]  }
  0xda   :  { %v253_v19 = vpack.c.bf16 %v251_v16, %v251_v16  ;;  %v479_v20 = vpack.c.bf16 %v477_v17, %v477_v17  ;;  %v703_v23 = vsel %vm207_vm2, %v695_v14, %v699_v15  ;;  %v478_v26 = vpack.c.bf16 %v476_v13, %v476_v13  ;;  %v2357_v6 = vld [vmem:[%s3054_s3 + $0x390] sm:$0xff]   ;;  %v2360_v9 = vld [vmem:[%s3054_s3 + $0x288] sm:$0xff]   ;;  %v2363_v12 = vld [vmem:[%s3054_s3 + $0x3c0] sm:$0xff]  }
  0xdb   :  { %v929_v27 = vsel %vm207_vm2, %v921_v18, %v925_v24  ;;  %v705_v30 = vpack.c.bf16 %v703_v23, %v703_v23  ;;  %v2729_v38 = vsel %vm207_vm2, %v2659_v60, %v203_v32  ;;  %v650_v40 = vrot.slane %v2671_v2, 4  ;;  %v2361_v10 = vld [vmem:[%s3054_s3 + $0x388] sm:$0xff]   ;;  %v2364_v18 = vld [vmem:[%s3054_s3 + $0x280] sm:$0xff]   ;;  %v2372_v32 = vld [vmem:[%s3054_s3 + $0x30] sm:$0xff]  }
  0xdc   :  { %415 = vmatprep.mubr.bf16.mxu0 %v253_v19  ;;  %641 = vmatprep.mubr.bf16.mxu1 %v479_v20  ;;  %v931_v31 = vpack.c.bf16 %v929_v27, %v929_v27  ;;  %v654_v41 = vrot.slane %v2673_v3, 3  ;;  %v876_v42 = vrot.slane %v2671_v2, 6  ;;  %v880_v43 = vrot.slane %v2673_v3, 5  ;;  %v2365_v19 = vld [vmem:[%s3054_s3 + $0x380] sm:$0xff]  }
  0xdd   :  { %416 = vmatmul.mubr.bf16.vlgmr.msra.gmra.mxu0 %v252_v25  ;;  %642 = vmatmul.mubr.bf16.vlgmr.msra.gmra.mxu1 %v478_v26  ;;  %v2737_v44 = vsel %vm207_vm2, %v423_v35, %v427_v39  ;;  %v649_v45 = vrot.slane %v2659_v60, 4  ;;  %v653_v46 = vrot.slane %v2661_v61, 3  ;;  %v875_v47 = vrot.slane %v2659_v60, 6  ;;  %v2375_v35 = vld [vmem:[%s3054_s3 + $0x168] sm:$0xff]   ;;  %v2378_v39 = vld [vmem:[%s3054_s3 + $0x60] sm:$0xff]  }
  0xde   :  { %2151 = vmatpush3.bf16.msra.mxu0 %v2336_v21  ;;  %2173 = vmatpush3.bf16.msra.mxu1 %v2337_v22  ;;  %v2749_v50 = vsel %vm207_vm2, %v650_v40, %v654_v41  ;;  %v2752_v51 = vsel %vm207_vm2, %v876_v42, %v880_v43  ;;  %v879_v52 = vrot.slane %v2661_v61, 5  ;;  %v694_v13 = vrot.slane %v2659_v60, 5  ;;  %v2379_v40 = vld [vmem:[%s3054_s3 + $0x160] sm:$0xff]   ;;  %v2382_v43 = vld [vmem:[%s3054_s3 + $0x58] sm:$0xff]  }
  0xdf   :  { %867 = vmatprep.mubr.bf16.mxu0 %v705_v30  ;;  %1093 = vmatprep.mubr.bf16.mxu1 %v931_v31  ;;  %v2762_v55 = vsel %vm207_vm2, %v649_v45, %v653_v46  ;;  %v698_v14 = vrot.slane %v2661_v61, 4  ;;  %v920_v15 = vrot.slane %v2659_v60, 7  ;;  %v924_v16 = vrot.slane %v2661_v61, 6  ;;  %v2366_v60 = vld [vmem:[%s3054_s3 + $0x78] sm:$0xff]   ;;  %v2371_v30 = vld [vmem:[%s3054_s3 + $0x170] sm:$0xff]   ;;  %v2380_v41 = vld [vmem:[%s3054_s3 + $0x20] sm:$0xff]  }
  0xe0   :  { %2152 = vmatprep.subr.bf16.mxu0 %v2338_v28  ;;  %2174 = vmatprep.subr.bf16.mxu1 %v2339_v29  ;;  %v2765_v56 = vsel %vm207_vm2, %v875_v47, %v879_v52  ;;  %v204_v17 = vrot.slane %v2673_v3, 7  ;;  %v424_v20 = vrot.slane %v2671_v2, 2  ;;  %v428_v21 = vrot.slane %v2673_v3, 1  ;;  %v2367_v61 = vld [vmem:[%s3054_s3 + $0x178] sm:$0xff]   ;;  %v2381_v42 = vld [vmem:[%s3054_s3 + $0x120] sm:$0xff]   ;;  %v2388_v52 = vld [vmem:[%s3054_s3 + $0x10] sm:$0xff]  }
  0xe1   :  { %v702_v22 = vsel %vm207_vm2, %v694_v13, %v698_v14  ;;  %v928_v23 = vsel %vm207_vm2, %v920_v15, %v924_v16  ;;  %v2368_v3 = vld [vmem:[%s3054_s3 + $0x38] sm:$0xff]   ;;  %v2405_v13 = vld [vmem:[%s3054_s3 + $0x330] sm:$0xff]   ;;  %v2408_v14 = vld [vmem:[%s3054_s3 + $0x228] sm:$0xff]  }
  0xe2   :  { %2153 = vmatpush3.bf16.msra.mxu0 %v2340_v33  ;;  %2175 = vmatpush3.bf16.msra.mxu1 %v2341_v34  ;;  %v209_v24 = vsel %vm207_vm2, %v2671_v2, %v204_v17  ;;  %v432_v25 = vsel %vm207_vm2, %v424_v20, %v428_v21  ;;  %v704_v26 = vpack.c.bf16 %v702_v22, %v702_v22  ;;  %v2369_v28 = vld [vmem:[%s3054_s3 + $0x138] sm:$0xff]   ;;  %v2370_v2 = vld [vmem:[%s3054_s3 + $0x70] sm:$0xff]   ;;  %v2374_v34 = vld [vmem:[%s3054_s3 + $0x68] sm:$0xff]  }
  0xe3   :  { %2154 = vmatprep.subr.bf16.mxu0 %v2342_v36  ;;  %2176 = vmatprep.subr.bf16.mxu1 %v2343_v37  ;;  %v930_v27 = vpack.c.bf16 %v928_v23, %v928_v23  ;;  %v211_v29 = vpack.c.bf16 %v209_v24, %v209_v24  ;;  %v434_v31 = vpack.c.bf16 %v432_v25, %v432_v25  ;;  %v2373_v33 = vld [vmem:[%s3054_s3 + $0x130] sm:$0xff]   ;;  %v2376_v36 = vld [vmem:[%s3054_s3 + $0x28] sm:$0xff]   ;;  %v2383_v45 = vld [vmem:[%s3054_s3 + $0x158] sm:$0xff]  }
  0xe4   :  { %v2377_v37 = vld [vmem:[%s3054_s3 + $0x128] sm:$0xff]   ;;  %v2384_v46 = vld [vmem:[%s3054_s3 + $0x18] sm:$0xff]   ;;  %v2410_v16 = vld [vmem:[%s3054_s3 + $0x260] sm:$0xff]  }
  0xe5   :  { %v2385_v47 = vld [vmem:[%s3054_s3 + $0x118] sm:$0xff]   ;;  %v2409_v15 = vld [vmem:[%s3054_s3 + $0x328] sm:$0xff]   ;;  %v2411_v17 = vld [vmem:[%s3054_s3 + $0x360] sm:$0xff]  }
  0xe6   :  { %2155 = vmatpush3.bf16.msra.mxu0 %v2344_v48  ;;  %2177 = vmatpush3.bf16.msra.mxu1 %v2345_v49  ;;  %v2386_v48 = vld [vmem:[%s3054_s3 + $0x50] sm:$0xff]   ;;  %v2414_v20 = vld [vmem:[%s3054_s3 + $0x258] sm:$0xff]   ;;  %v2422_v25 = vld [vmem:[%s3054_s3 + $0x248] sm:$0xff]  }
  0xe7   :  { %2156 = vmatprep.subr.bf16.mxu0 %v2346_v53  ;;  %2178 = vmatprep.subr.bf16.mxu1 %v2347_v54  ;;  %v2387_v49 = vld [vmem:[%s3054_s3 + $0x150] sm:$0xff]   ;;  %v2390_v54 = vld [vmem:[%s3054_s3 + $0x48] sm:$0xff]   ;;  %v2415_v21 = vld [vmem:[%s3054_s3 + $0x358] sm:$0xff]  }
  0xe8   :  { %v2389_v53 = vld [vmem:[%s3054_s3 + $0x110] sm:$0xff]  }
  0xe9   :  { %v2418_v22 = vld [vmem:[%s3054_s3 + $0x250] sm:$0xff]  }
  0xea   :  { %2157 = vmatpush3.bf16.msra.mxu0 %v2348_v57  ;;  %2179 = vmatpush3.bf16.msra.mxu1 %v2349_v58  ;;  %v2391_v57 = vld [vmem:[%s3054_s3 + $0x148] sm:$0xff]   ;;  %v2419_v23 = vld [vmem:[%s3054_s3 + $0x350] sm:$0xff]  }
  0xeb   :  { %2158 = vmatprep.subr.bf16.mxu0 %v2350_v59  ;;  %2180 = vmatprep.subr.bf16.mxu1 %v2351_v62  ;;  %v2392_v58 = vld [vmem:[%s3054_s3 + $0x8] sm:$0xff]   ;;  %v2394_v62 = vld [vmem:[%s3054_s3 + $0x40] sm:$0xff]   ;;  %v2420_v24 = vld [vmem:[%s3054_s3 + $0x210] sm:$0xff]  }
  0xec   :  { %v2393_v59 = vld [vmem:[%s3054_s3 + $0x108] sm:$0xff]  }
  0xee   :  { %2159 = vmatpush3.bf16.msra.mxu0 %v2352_v63  ;;  %2181 = vmatpush3.bf16.msra.mxu1 %v2353_v0  ;;  %v2395_v63 = vld [vmem:[%s3054_s3 + $0x140] sm:$0xff]  }
  0xef   :  { %2160 = vmatprep.subr.bf16.mxu0 %v2354_v1  ;;  %2182 = vmatprep.subr.bf16.mxu1 %v2355_v4  ;;  %v2396_v0 = vld [vmem:[%s3054_s3] sm:$0xff]   ;;  %v2398_v4 = vld [vmem:[%s3054_s3 + $0x278] sm:$0xff]  }
  0xf0   :  { %v2397_v1 = vld [vmem:[%s3054_s3 + $0x100] sm:$0xff]  }
  0xf2   :  { %2161 = vmatpush3.bf16.msra.mxu0 %v2356_v5  ;;  %2183 = vmatpush3.bf16.msra.mxu1 %v2357_v6  ;;  %v2399_v5 = vld [vmem:[%s3054_s3 + $0x378] sm:$0xff]  }
  0xf3   :  { %2162 = vmatprep.subr.bf16.mxu0 %v2358_v7  ;;  %2184 = vmatprep.subr.bf16.mxu1 %v2359_v8  ;;  %v2400_v6 = vld [vmem:[%s3054_s3 + $0x238] sm:$0xff]   ;;  %v210_v7 = vpack.c.bf16 %v2729_v38, %v2729_v38  ;;  %v2403_v38 = vld [vmem:[%s3054_s3 + $0x370] sm:$0xff]  }
  0xf4   :  { %v2401_v8 = vld [vmem:[%s3054_s3 + $0x338] sm:$0xff]  }
  0xf6   :  { %2163 = vmatpush3.bf16.msra.mxu0 %v2360_v9  ;;  %2185 = vmatpush3.bf16.msra.mxu1 %v2361_v10  ;;  %v433_v9 = vpack.c.bf16 %v2737_v44, %v2737_v44  ;;  %v2402_v10 = vld [vmem:[%s3054_s3 + $0x270] sm:$0xff]  }
  0xf7   :  { %2164 = vmatprep.subr.bf16.mxu0 %v2362_v11  ;;  %2186 = vmatprep.subr.bf16.mxu1 %v2363_v12  ;;  %v660_v11 = vpack.c.bf16 %v2749_v50, %v2749_v50  ;;  %v886_v12 = vpack.c.bf16 %v2752_v51, %v2752_v51  ;;  %v2404_v44 = vld [vmem:[%s3054_s3 + $0x230] sm:$0xff]   ;;  %v2406_v50 = vld [vmem:[%s3054_s3 + $0x268] sm:$0xff]  }
  0xf8   :  { %v2407_v51 = vld [vmem:[%s3054_s3 + $0x368] sm:$0xff]  }
  0xfa   :  { %2165 = vmatpush3.bf16.msra.mxu0 %v2364_v18  ;;  %2187 = vmatpush3.bf16.msra.mxu1 %v2365_v19  ;;  %v2412_v18 = vld [vmem:[%s3054_s3 + $0x220] sm:$0xff]  }
  0xfb   :  { %2194 = vmatprep.subr.bf16.mxu0 %v2366_v60  ;;  %2216 = vmatprep.subr.bf16.mxu1 %v2367_v61  ;;  %v2413_v19 = vld [vmem:[%s3054_s3 + $0x320] sm:$0xff]   ;;  %v2416_v60 = vld [vmem:[%s3054_s3 + $0x218] sm:$0xff]  }
  0xfc   :  { %v2417_v61 = vld [vmem:[%s3054_s3 + $0x318] sm:$0xff]  }
  0xfd   :  { %868 = vmatmul.mubr.bf16.vlgmr.msra.gmra.mxu0 %v704_v26  ;;  %1094 = vmatmul.mubr.bf16.vlgmr.msra.gmra.mxu1 %v930_v27  ;;  %v2423_v26 = vld [vmem:[%s3054_s3 + $0x348] sm:$0xff]  }
  0xfe   :  { %2195 = vmatpush3.bf16.msra.mxu0 %v2368_v3  ;;  %1229 = vmatprep.mubr.bf16.mxu0 %v211_v29  ;;  %v2421_v3 = vld [vmem:[%s3054_s3 + $0x310] sm:$0xff]   ;;  %v2424_v27 = vld [vmem:[%s3054_s3 + $0x208] sm:$0xff]   ;;  %v2426_v29 = vld [vmem:[%s3054_s3 + $0x240] sm:$0xff]  }
  0xff   :  { %2217 = vmatpush3.bf16.msra.mxu1 %v2369_v28  ;;  %1365 = vmatprep.mubr.bf16.mxu1 %v434_v31  ;;  %v2425_v28 = vld [vmem:[%s3054_s3 + $0x308] sm:$0xff]   ;;  %v2429_v31 = vld [vmem:[%s3054_s3 + $0x300] sm:$0xff]  }
 0x100   :  { %2196 = vmatprep.subr.bf16.mxu0 %v2370_v2  ;;  %2218 = vmatprep.subr.bf16.mxu1 %v2371_v30  ;;  %v2427_v2 = vld [vmem:[%s3054_s3 + $0x340] sm:$0xff]  }
 0x101   :  { %v2428_v30 = vld [vmem:[%s3054_s3 + $0x200] sm:$0xff]  }
 0x102   :  { %2197 = vmatpush3.bf16.msra.mxu0 %v2372_v32  ;;  %v659_v32 = vpack.c.bf16 %v2762_v55, %v2762_v55 }
 0x103   :  { %2219 = vmatpush3.bf16.msra.mxu1 %v2373_v33  ;;  %2198 = vmatprep.subr.bf16.mxu0 %v2374_v34  ;;  %v885_v33 = vpack.c.bf16 %v2765_v56, %v2765_v56 }
 0x104   :  { %2220 = vmatprep.subr.bf16.mxu1 %v2375_v35 }
 0x106   :  { %2199 = vmatpush3.bf16.msra.mxu0 %v2376_v36 }
 0x107   :  { %2221 = vmatpush3.bf16.msra.mxu1 %v2377_v37  ;;  %2200 = vmatprep.subr.bf16.mxu0 %v2378_v39 }
 0x108   :  { %2222 = vmatprep.subr.bf16.mxu1 %v2379_v40 }
 0x10a   :  { %2201 = vmatpush3.bf16.msra.mxu0 %v2380_v41 }
 0x10b   :  { %2223 = vmatpush3.bf16.msra.mxu1 %v2381_v42  ;;  %2202 = vmatprep.subr.bf16.mxu0 %v2382_v43 }
 0x10c   :  { %2224 = vmatprep.subr.bf16.mxu1 %v2383_v45 }
 0x10e   :  { %2203 = vmatpush3.bf16.msra.mxu0 %v2384_v46 }
 0x10f   :  { %2225 = vmatpush3.bf16.msra.mxu1 %v2385_v47  ;;  %2204 = vmatprep.subr.bf16.mxu0 %v2386_v48 }
 0x110   :  { %2226 = vmatprep.subr.bf16.mxu1 %v2387_v49 }
 0x112   :  { %2205 = vmatpush3.bf16.msra.mxu0 %v2388_v52 }
 0x113   :  { %2227 = vmatpush3.bf16.msra.mxu1 %v2389_v53  ;;  %2206 = vmatprep.subr.bf16.mxu0 %v2390_v54 }
 0x114   :  { %2228 = vmatprep.subr.bf16.mxu1 %v2391_v57 }
 0x116   :  { %2207 = vmatpush3.bf16.msra.mxu0 %v2392_v58 }
 0x117   :  { %2229 = vmatpush3.bf16.msra.mxu1 %v2393_v59  ;;  %2208 = vmatprep.subr.bf16.mxu0 %v2394_v62 }
 0x118   :  { %2230 = vmatprep.subr.bf16.mxu1 %v2395_v63 }
 0x11a   :  { %2209 = vmatpush3.bf16.msra.mxu0 %v2396_v0 }
 0x11b   :  { %2231 = vmatpush3.bf16.msra.mxu1 %v2397_v1  ;;  %2238 = vmatprep.subr.bf16.mxu0 %v2398_v4 }
 0x11c   :  { %2260 = vmatprep.subr.bf16.mxu1 %v2399_v5 }
 0x11d   :  { %1230 = vmatmul.mubr.bf16.vlgmr.msra.gmra.mxu0 %v210_v7 }
 0x11e   :  { %1366 = vmatmul.mubr.bf16.vlgmr.msra.gmra.mxu1 %v433_v9  ;;  %2239 = vmatpush3.bf16.msra.mxu0 %v2400_v6 }
 0x11f   :  { %1501 = vmatprep.mubr.bf16.mxu0 %v660_v11  ;;  %2261 = vmatpush3.bf16.msra.mxu1 %v2401_v8 }
 0x120   :  { %1637 = vmatprep.mubr.bf16.mxu1 %v886_v12  ;;  %2240 = vmatprep.subr.bf16.mxu0 %v2402_v10 }
 0x121   :  { %2262 = vmatprep.subr.bf16.mxu1 %v2403_v38 }
 0x122   :  { %2241 = vmatpush3.bf16.msra.mxu0 %v2404_v44 }
 0x123   :  { %2263 = vmatpush3.bf16.msra.mxu1 %v2405_v13  ;;  %2242 = vmatprep.subr.bf16.mxu0 %v2406_v50 }
 0x124   :  { %2264 = vmatprep.subr.bf16.mxu1 %v2407_v51 }
 0x126   :  { %2243 = vmatpush3.bf16.msra.mxu0 %v2408_v14 }
 0x127   :  { %2265 = vmatpush3.bf16.msra.mxu1 %v2409_v15  ;;  %2244 = vmatprep.subr.bf16.mxu0 %v2410_v16 }
 0x128   :  { %2266 = vmatprep.subr.bf16.mxu1 %v2411_v17 }
 0x12a   :  { %2245 = vmatpush3.bf16.msra.mxu0 %v2412_v18 }
 0x12b   :  { %2267 = vmatpush3.bf16.msra.mxu1 %v2413_v19  ;;  %2246 = vmatprep.subr.bf16.mxu0 %v2414_v20  ;;  %v2105_v20 = vld [vmem:[%s3055_s4] ss:$0 sm:$0xff]  ;;  %s2475_s4 = smov [#allocation2]  }
 0x12c   :  { %2268 = vmatprep.subr.bf16.mxu1 %v2415_v21  ;;  %s1711_s5 = sshll.u32 %s2475_s4, 4  ;;  %s1712_s5 = int_to_ptr.vmem [resolvable:$true] %s1711_s5 }
 0x12d   :  { %s2430_s23 = scalar_lea.vmem %s1712_s5, 32  ;;  %p2435_p1 = scmp.lt.s32.totalorder %s1712_s5, %s1712_s5 }
 0x12e   :  { %2247 = vmatpush3.bf16.msra.mxu0 %v2416_v60  ;;  %p2431_p0 = scmp.ne.s32.totalorder %s1712_s5, %s2430_s23  ;;  %p2436_p2 = scmp.lt.s32.totalorder %s2430_s23, %s2430_s23 }
 0x12f   :  { %2269 = vmatpush3.bf16.msra.mxu1 %v2417_v61  ;;  %2248 = vmatprep.subr.bf16.mxu0 %v2418_v22  ;;  %v1658_v22 = vlaneseq }
 0x130   :  { %2270 = vmatprep.subr.bf16.mxu1 %v2419_v23  ;;  %p2437_p3 = por %p2436_p2, %p2435_p1 }
 0x132   :  { %2249 = vmatpush3.bf16.msra.mxu0 %v2420_v24  ;;  %p2438_p4 = pnand %p2437_p3, %p2431_p0 }
 0x133   :  { %2271 = vmatpush3.bf16.msra.mxu1 %v2421_v3  ;;  %2250 = vmatprep.subr.bf16.mxu0 %v2422_v25  ;;  %v1659_v25 = vshrl.u32 %v1658_v22, 7 }
 0x134   :  { %2272 = vmatprep.subr.bf16.mxu1 %v2423_v26 }
 0x136   :  { %2251 = vmatpush3.bf16.msra.mxu0 %v2424_v27 }
 0x137   :  { %2273 = vmatpush3.bf16.msra.mxu1 %v2425_v28  ;;  %2252 = vmatprep.subr.bf16.mxu0 %v2426_v29  ;;  %v1661_v28 = vand.u32 127, %v1658_v22  ;;  %v1662_v29 = vmul.u32 10, %v1659_v25 }
 0x138   :  { %2274 = vmatprep.subr.bf16.mxu1 %v2427_v2 }
 0x13a   :  { %2253 = vmatpush3.bf16.msra.mxu0 %v2428_v30 }
 0x13b   :  { %2275 = vmatpush3.bf16.msra.mxu1 %v2429_v31  ;;  %v1663_v31 = vadd.s32 %v1662_v29, %v1661_v28 }
 0x13d   :  { %1502 = vmatmul.mubr.bf16.vlgmr.msra.gmra.mxu0 %v659_v32 }
 0x13e   :  { %1638 = vmatmul.mubr.bf16.vlgmr.msra.gmra.mxu1 %v885_v33 }
 0x19d   :  { %v2122_v34 = vpop.f32.mrf.mxu0  ;;  %v2144_v35 = vpop.f32.mrf.mxu1 }
 0x19f   :  { %v2123_v36 = vpop.f32.mrf.mxu0  ;;  %v2145_v37 = vpop.f32.mrf.mxu1 }
 0x1a0   :  { %v2124_v39 = vadd.f32 %v2123_v36, %v2122_v34  ;;  %v2146_v40 = vadd.f32 %v2145_v37, %v2144_v35 }
 0x1a1   :  { %v2125_v41 = vpop.f32.mrf.mxu0  ;;  %v2147_v42 = vpop.f32.mrf.mxu1 }
 0x1a3   :  { %v2126_v43 = vpop.f32.mrf.mxu0  ;;  %v2148_v45 = vpop.f32.mrf.mxu1 }
 0x1bd   :  { %v2166_v46 = vpop.f32.mrf.mxu0  ;;  %v2188_v47 = vpop.f32.mrf.mxu1 }
 0x1bf   :  { %v2167_v48 = vpop.f32.mrf.mxu0  ;;  %v2189_v49 = vpop.f32.mrf.mxu1 }
 0x1c0   :  { %v2168_v55 = vadd.f32 %v2167_v48, %v2166_v46  ;;  %v2190_v52 = vadd.f32 %v2189_v49, %v2188_v47 }
 0x1c1   :  { %v2169_v53 = vpop.f32.mrf.mxu0  ;;  %v2191_v56 = vpop.f32.mrf.mxu1 }
 0x1c3   :  { %v2170_v54 = vpop.f32.mrf.mxu0  ;;  %v2192_v57 = vpop.f32.mrf.mxu1 }
 0x1dd   :  { %v2210_v58 = vpop.f32.mrf.mxu0 }
 0x1de   :  { %v2232_v59 = vpop.f32.mrf.mxu1 }
 0x1df   :  { %v2211_v62 = vpop.f32.mrf.mxu0 }
 0x1e0   :  { %v2212_v63 = vadd.f32 %v2211_v62, %v2210_v58  ;;  %v2233_v0 = vpop.f32.mrf.mxu1 }
 0x1e1   :  { %v2234_v1 = vadd.f32 %v2233_v0, %v2232_v59  ;;  %v2213_v4 = vpop.f32.mrf.mxu0 }
 0x1e2   :  { %v1232_v5 = vadd.f32 %v2212_v63, %v2124_v39  ;;  %v2235_v6 = vpop.f32.mrf.mxu1 }
 0x1e3   :  { %v1368_v7 = vadd.f32 %v2234_v1, %v2146_v40  ;;  %v2214_v8 = vpop.f32.mrf.mxu0 }
 0x1e4   :  { %v2236_v9 = vpop.f32.mrf.mxu1 }
 0x1e5   :  { %v1645_v10 = vadd.f32 %v1368_v7, %v1232_v5 }
 0x1fd   :  { %v2254_v11 = vpop.f32.mrf.mxu0 }
 0x1fe   :  { %v2276_v38 = vpop.f32.mrf.mxu1 }
 0x1ff   :  { %v2255_v12 = vpop.f32.mrf.mxu0 }
 0x200   :  { %v2256_v44 = vadd.f32 %v2255_v12, %v2254_v11  ;;  %v2277_v13 = vpop.f32.mrf.mxu1 }
 0x201   :  { %v2278_v50 = vadd.f32 %v2277_v13, %v2276_v38  ;;  %v2257_v51 = vpop.f32.mrf.mxu0 }
 0x202   :  { %v1504_v14 = vadd.f32 %v2256_v44, %v2168_v55  ;;  %v2279_v15 = vpop.f32.mrf.mxu1 }
 0x203   :  { %v1640_v16 = vadd.f32 %v2278_v50, %v2190_v52  ;;  %v2258_v17 = vpop.f32.mrf.mxu0 }
 0x204   :  { %v2280_v18 = vpop.f32.mrf.mxu1 }
 0x205   :  { %v1646_v19 = vadd.f32 %v1640_v16, %v1504_v14 }
 0x207   :  { %v1647_v21 = vadd.f32 %v1646_v19, %v1645_v10 }
 0x209   :  { %v1655_v60 = vadd.f32 %v2105_v20, %v1647_v21 }
 0x20b   :  { %v1664_v61 = vsel %vm1656_vm3, %v1655_v60, -inf  ;;  %1657 = vst.msk [vmem:[#allocation2] sm:$0x3] %vm1656_vm3, %v1655_v60 }
 0x20c   :  { %1665 = vmax.xlane.f32.xlu0 %v1664_v61 }
 0x295   :  { %v1666_v23 = vpop.xlane.xlu0 %1665 }
 0x296   :  { %v1667_v24 = vsel %vm97_vm0, %v1666_v23, -inf }
 0x297   :  { %v1668_v3 = vrot.slane %v1667_v24, 4 }
 0x299   :  { %v1669_v26 = vmax.f32 %v1667_v24, %v1668_v3 }
 0x29b   :  { %v1670_v27 = vrot.slane %v1669_v26, 2 }
 0x29d   :  { %v1671_v2 = vmax.f32 %v1669_v26, %v1670_v27 }
 0x29f   :  { %v1672_v30 = vrot.slane %v1671_v2, 1 }
 0x2a1   :  { %v1673_v32 = vmax.f32 %v1671_v2, %v1672_v30 }
 0x2a3   :  { %vm1674_vm4 = vcmp.eq.f32.partialorder %v1655_v60, %v1673_v32 }
 0x2a4   :  { %v1675_v33 = vsel %vm1674_vm4, %v1663_v31, 20 }
 0x2a5   :  { %v1676_v34 = vsel %vm1656_vm3, %v1675_v33, 2147483647 }
 0x2a6   :  { %v1678_v35 = vshra.s32 %v1676_v34, 16  ;;  %v1677_v37 = vand.u32 65535, %v1676_v34 }
 0x2a8   :  { %v1680_v36 = vcvt.s32.f32 %v1678_v35  ;;  %v1679_v40 = vcvt.s32.f32 %v1677_v37 }
 0x2aa   :  { %1681 = vmin.xlane.f32.xlu1 %v1680_v36 }
 0x333   :  { %v1682_v39 = vpop.xlane.xlu1 %1681 }
 0x334   :  { %vm1683_vm5 = vcmp.eq.f32.partialorder %v1680_v36, %v1682_v39 }
 0x335   :  { %v1684_v41 = vsel %vm1683_vm5, %v1679_v40, inf }
 0x336   :  { %1685 = vmin.xlane.f32.xlu1 %v1684_v41 }
 0x337   :  { %2441 = shalt.err (!%p2438_p4)
}
 0x338   :  { %1714 = dma.vmem_to_hbm [thread:$0]  %s1712_s5, 32, %s3057_s6, [#allocation3]   ;;  %v1688_v42 = vcvt.f32.s32 %v1682_v39  ;;  %vm1701_vm8 = vcmask 0  }
 0x339   :  { %s2476_s26 = smov [#allocation4]  }
 0x33a   :  { %v1689_v45 = vshll.u32 %v1688_v42, 16  ;;  %s1721_s0 = sshll.u32 %s2476_s26, 4  ;;  %s1722_s0 = int_to_ptr.vmem [resolvable:$true] %s1721_s0 }
 0x33b   :  { %s2450_s6 = scalar_lea.vmem %s1722_s0, 16  ;;  %s2454_s27 = scalar_lea.vmem %s1722_s0, 32 }
 0x33c   :  { %p2451_p5 = scmp.ne.s32.totalorder %s1722_s0, %s2450_s6  ;;  %p2455_p6 = scmp.lt.s32.totalorder %s1722_s0, %s1722_s0 }
 0x33d   :  { %p2456_p7 = scmp.lt.s32.totalorder %s2454_s27, %s2450_s6 }
 0x33f   :  { %p2457_p8 = por %p2456_p7, %p2455_p6 }
 0x341   :  { %p2458_p9 = pnand %p2457_p8, %p2451_p5 }
 0x3bf   :  { %v1686_v43 = vpop.xlane.xlu1 %1685 }
 0x3c0   :  { %v1687_v46 = vcvt.f32.s32 %v1686_v43 }
 0x3c2   :  { %v1690_v47 = vadd.s32 %v1689_v45, %v1687_v46 }
 0x3c4   :  { %v1691_v48 = vsel %vm97_vm0, %v1690_v47, 2147483647 }
 0x3c5   :  { %v1692_v49 = vrot.slane %v1691_v48, 4 }
 0x3c7   :  { %vm1693_vm6 = vcmp.lt.s32.totalorder %v1691_v48, %v1692_v49 }
 0x3c8   :  { %v1694_v55 = vsel %vm1693_vm6, %v1691_v48, %v1692_v49 }
 0x3c9   :  { %v1695_v52 = vrot.slane %v1694_v55, 2 }
 0x3cb   :  { %vm1696_vm7 = vcmp.lt.s32.totalorder %v1694_v55, %v1695_v52 }
 0x3cc   :  { %v1697_v53 = vsel %vm1696_vm7, %v1694_v55, %v1695_v52 }
 0x3cd   :  { %v1698_v56 = vrot.slane %v1697_v53, 1 }
 0x3cf   :  { %vm1699_vm9 = vcmp.lt.s32.totalorder %v1697_v53, %v1698_v56 }
 0x3d0   :  { %v1700_v54 = vsel %vm1699_vm9, %v1697_v53, %v1698_v56 }
 0x3d1   :  { %1702 = vst.msk [vmem:[#allocation4] sm:$0x1] %vm1701_vm8, %v1700_v54 }
 0x3d2   :  { %2461 = shalt.err (!%p2458_p9)
}
 0x3d3   :  { %1724 = dma.vmem_to_hbm [thread:$0]  %s1722_s0, 16, %s3058_s7, [#allocation5]  }
 0x3d4   :  { %2470 = dma.done.wait [#allocation3], 32  }
 0x3d5   :  { %2471 = vsyncadd [#allocation3], 4294967264 }
 0x3d6   :  { %2472 = dma.done.wait [#allocation5], 16  }
 0x3d7   :  { %2473 = vsyncadd [#allocation5], 4294967280 }
 0x3d8   :  { %1733 = vsyncpa [#allocation3], 1 }
 0x3d9   :  { %1734 = vsyncpa [#allocation5], 1 }

</bundles_post_ra>
